<compile_context>
chip_gen: v6e
topology: v6e:2x2x1
jax: 0.10.0
libtpu: 0.0.40
codegen_flags: <defaults>
</compile_context>

<pallas_src>
import functools

import jax
import jax.numpy as jnp
from jax.experimental import pallas as pl
from jax.experimental.pallas import tpu as pltpu

LANE = 128                      # channel padding target (vreg lanes / MXU N)
_SQRT1_2 = 0.7071067811865476   # 1/sqrt(2) for exact erf-GELU


def _round_up(v, m):
    return (v + m - 1) // m * m


def _pad2(a, rows, cols):
    out = jnp.zeros((rows, cols), a.dtype)
    return out.at[: a.shape[0], : a.shape[1]].set(a)


def _vmem_capacity_bytes():
    """Per-core VMEM capacity; falls back to the smallest generation (v7x, 64 MiB)."""
    try:
        cap = int(getattr(pltpu.get_tpu_info(), "vmem_capacity_bytes", 0))
        if cap > 0:
            return cap
    except Exception:
        pass
    return 64 << 20


def _layer_vmem_bytes(n_pad, tm):
    """VMEM footprint of one sage_layer call (2 buffers for every BlockSpec)."""
    resident = 2 * (2 * n_pad * LANE * 2) + 2 * (LANE * LANE * 2 + LANE * 4)
    pipelined = 2 * (tm * n_pad * 1 + tm * 4 + tm * LANE * 2)   # A(int8), inv_deg, out
    return resident + pipelined


def _pick_row_tile(n, vmem_cap):
    """Row tile TM for the A matmul, budgeted against this generation's VMEM.

    Accounts for everything the layer kernel holds (resident x and x@W_l,
    W_r / bias, double-buffered A / inv_deg / output tiles), not just the A
    tile. Also keeps >=4 row tiles where possible so each v7x TensorCore still
    pipelines >=2 grid steps after the megacore split.
    """
    n128 = _round_up(max(int(n), 1), LANE)
    budget = int(vmem_cap * 0.7)
    tm = min(512, n128)
    while tm > LANE and _layer_vmem_bytes(n128, tm) > budget:
        tm //= 2
    while tm > LANE and n128 // tm < 4:
        tm //= 2
    n_pad = _round_up(n128, tm)
    return tm, n_pad


def _layer_vmem_limit(n_pad, tm, vmem_cap):
    need = _layer_vmem_bytes(n_pad, tm) + (16 << 20)   # compiler-scratch headroom
    return int(min(max(need, 32 << 20), int(vmem_cap * 0.9)))


# --------------------------------------------------------------------------
# Pallas kernels
# --------------------------------------------------------------------------
def _sage_layer_kernel(a_ref, invdeg_ref, xwl_ref, x_ref, wr_ref, b_ref, o_ref,
                       *, apply_gelu: bool):
    """One SAGEConv layer (+ optional exact GELU) for a (TM, N_pad) tile of A.

      agg = (A_counts[tile] @ (x @ W_l)) * inv_deg[tile]   (int8 A -> bf16, MXU, f32 acc)
      h   = agg + x[tile] @ W_r + b_l
      h   = GELU(h)                                        (all but the last layer)
    (inter-layer F.dropout is identity in eval mode)
    """
    tm = o_ref.shape[0]
    agg = jnp.dot(a_ref[...].astype(jnp.bfloat16), xwl_ref[...],
                  preferred_element_type=jnp.float32) * invdeg_ref[...]
    row0 = pl.multiple_of(pl.program_id(0) * tm, tm)
    x_tile = x_ref[pl.ds(row0, tm), :]          # slice resident x; no extra DMA
    h = agg + jnp.dot(x_tile, wr_ref[...],
                      preferred_element_type=jnp.float32) + b_ref[...]
    if apply_gelu:
        # nn.GELU() default = exact erf-based GELU, kept in f32 (v5e-safe).
        h = 0.5 * h * (1.0 + jax.lax.erf(h * _SQRT1_2))
    o_ref[...] = h.astype(o_ref.dtype)


def _out_head_kernel(x_ref, w_ref, b_ref, g_ref, beta_ref, o_ref, *,
                     c_true: int):
    """nn.Sequential(Linear, LayerNorm(eps=1e-12), Dropout) — Dropout = id (eval).

    Channels are zero-padded to 128 lanes; h is masked explicitly so the
    LayerNorm statistics never depend on padded weight/bias lanes being zero.
    """
    h = jnp.dot(x_ref[...], w_ref[...],
                preferred_element_type=jnp.float32) + b_ref[...]
    mask = jax.lax.broadcasted_iota(jnp.int32, h.shape, 1) < c_true
    h = jnp.where(mask, h, 0.0)
    inv_c = 1.0 / c_true
    mean = jnp.sum(h, axis=-1, keepdims=True) * inv_c
    diff = jnp.where(mask, h - mean, 0.0)
    var = jnp.sum(diff * diff, axis=-1, keepdims=True) * inv_c
    o_ref[...] = diff * jax.lax.rsqrt(var + 1e-12) * g_ref[...] + beta_ref[...]


# --------------------------------------------------------------------------
# pallas_call wrappers (grid over node rows, small operands VMEM-resident)
# --------------------------------------------------------------------------
def sage_layer(a_i8, inv_deg, xwl, x, wr, b, *, tm, apply_gelu, vmem_limit):
    n_pad, c = x.shape
    grid = (n_pad // tm,)
    kernel = functools.partial(_sage_layer_kernel, apply_gelu=apply_gelu)
    cost = pl.CostEstimate(
        flops=int(2 * n_pad * n_pad * c + 2 * n_pad * c * c),
        transcendentals=int(n_pad * c) if apply_gelu else 0,
        bytes_accessed=int(n_pad * n_pad                       # A (int8)
                           + (3 * n_pad * c + c * c) * 2       # xwl, x, out, W_r (bf16)
                           + (n_pad + c) * 4),                 # inv_deg, bias (f32)
    )
    return pl.pallas_call(
        kernel,
        out_shape=jax.ShapeDtypeStruct((n_pad, c), jnp.bfloat16),
        grid_spec=pltpu.PrefetchScalarGridSpec(
            num_scalar_prefetch=0,
            grid=grid,
            in_specs=[
                pl.BlockSpec((tm, n_pad), lambda i: (i, 0)),   # A row tile (int8, pipelined)
                pl.BlockSpec((tm, 1), lambda i: (i, 0)),       # inv_deg row tile (f32)
                pl.BlockSpec((n_pad, c), lambda i: (0, 0)),    # x @ W_l, resident
                pl.BlockSpec((n_pad, c), lambda i: (0, 0)),    # x, resident (sliced in-kernel)
                pl.BlockSpec((c, c), lambda i: (0, 0)),        # W_r, resident
                pl.BlockSpec((1, c), lambda i: (0, 0)),        # b_l (f32)
            ],
            out_specs=pl.BlockSpec((tm, c), lambda i: (i, 0)),
        ),
        compiler_params=pltpu.CompilerParams(
            dimension_semantics=("parallel",),     # shard row tiles across TCs (v7x)
            vmem_limit_bytes=vmem_limit,
        ),
        cost_estimate=cost,
    )(a_i8, inv_deg, xwl, x, wr, b)


def out_head(x, w, b, gamma, beta, *, th, c_true):
    t_pad, c = x.shape
    kernel = functools.partial(_out_head_kernel, c_true=c_true)
    cost = pl.CostEstimate(
        flops=int(2 * t_pad * c * c + 8 * t_pad * c),
        transcendentals=int(t_pad),
        bytes_accessed=int((x.size + w.size) * 2 + (t_pad * c + 3 * c) * 4),
    )
    return pl.pallas_call(
        kernel,
        out_shape=jax.ShapeDtypeStruct((t_pad, c), jnp.float32),
        grid_spec=pltpu.PrefetchScalarGridSpec(
            num_scalar_prefetch=0,
            grid=(t_pad // th,),
            in_specs=[
                pl.BlockSpec((th, c), lambda i: (i, 0)),       # x row tile
                pl.BlockSpec((c, c), lambda i: (0, 0)),        # W, resident
                pl.BlockSpec((1, c), lambda i: (0, 0)),        # b
                pl.BlockSpec((1, c), lambda i: (0, 0)),        # gamma
                pl.BlockSpec((1, c), lambda i: (0, 0)),        # beta
            ],
            out_specs=pl.BlockSpec((th, c), lambda i: (i, 0)),
        ),
        compiler_params=pltpu.CompilerParams(
            dimension_semantics=("parallel",),
        ),
        cost_estimate=cost,
    )(x, w, b, gamma, beta)


# --------------------------------------------------------------------------
# Glue: int8 adjacency counts + per-row inv-degree, channel padding / weights
# --------------------------------------------------------------------------
def build_adj_counts(edge_index, num_nodes, n_pad):
    # edge_index: (2, E) int32, row 0 = source j, row 1 = target i (j -> i).
    # Raw adjacency COUNTS stored as int8 (half the HBM bytes of bf16); the
    # 1/deg mean normalization is a per-row f32 scale applied in-kernel.
    # Duplicate edges are counted in both numerator and degree (message-level
    # mean, matching PyG SAGEConv). Padded rows/cols are 0.
    src, dst = edge_index[0], edge_index[1]
    counts = jnp.zeros((n_pad, n_pad), jnp.int32).at[dst, src].add(1)
    counts = jnp.minimum(counts, 127)   # int8-safe
    # TODO(synk): exact only while no single edge is duplicated >127 times.
    deg = counts.sum(axis=1, keepdims=True)
    inv_deg = 1.0 / jnp.maximum(deg, 1).astype(jnp.float32)     # (N_pad, 1) f32
    return counts.astype(jnp.int8), inv_deg


def prepare_params(params):
    """Zero-pad channel dims to 128 lanes, cast weights to bf16."""
    prepared = {"convs": []}
    for conv in params["convs"]:
        prepared["convs"].append({
            "w_l": _pad2(conv["w_l"], LANE, LANE).astype(jnp.bfloat16),  # (128,128)
            "w_r": _pad2(conv["w_r"], LANE, LANE).astype(jnp.bfloat16),  # (128,128)
            "b": _pad2(conv["b_l"].reshape(1, -1), 1, LANE),             # f32 (1,128)
        })
    out = params["out"]
    prepared["out"] = {
        "w": _pad2(out["w"], LANE, LANE).astype(jnp.bfloat16),
        "b": _pad2(out["b"].reshape(1, -1), 1, LANE),
        "gamma": _pad2(out["gamma"].reshape(1, -1), 1, LANE),
        "beta": _pad2(out["beta"].reshape(1, -1), 1, LANE),
        "c_true": int(out["w"].shape[0]),
    }
    return prepared


# --------------------------------------------------------------------------
# Full GraphSAGEEncoder forward
# --------------------------------------------------------------------------
def graphsage_encoder_forward(params, x, edge_index, num_trg_nodes):
    n, c_in = x.shape
    vmem_cap = _vmem_capacity_bytes()
    tm, n_pad = _pick_row_tile(n, vmem_cap)
    vmem_limit = _layer_vmem_limit(n_pad, tm, vmem_cap)

    a_i8, inv_deg = build_adj_counts(edge_index, n, n_pad)      # (N_pad,N_pad) i8
    h = (jnp.zeros((n_pad, LANE), jnp.float32)
         .at[:n, :c_in].set(x).astype(jnp.bfloat16))            # lane-padded feats

    prepared = prepare_params(params)
    num_layers = len(prepared["convs"])
    for i, conv in enumerate(prepared["convs"]):
        # Neighbor-side projection x @ W_l once per layer (tiny (N,128)x(128,128)
        # matmul, left to XLA). Keeps the in-kernel self matmul at K=128 and
        # removes the [agg | x] concat scratch roundtrip entirely.
        xwl = jnp.dot(h, conv["w_l"],
                      preferred_element_type=jnp.float32).astype(jnp.bfloat16)
        h = sage_layer(a_i8, inv_deg, xwl, h, conv["w_r"], conv["b"],
                       tm=tm, apply_gelu=(i != num_layers - 1),
                       vmem_limit=vmem_limit)

    out = prepared["out"]
    t = int(num_trg_nodes)
    th = 128 if t >= 128 else _round_up(t, 8)
    t_pad = _round_up(t, th)
    x_head = jnp.zeros((t_pad, LANE), jnp.bfloat16).at[:t].set(h[:t])
    y = out_head(x_head, out["w"], out["b"], out["gamma"], out["beta"],
                 th=th, c_true=out["c_true"])
    return y[:t, :out["c_true"]]


# --------------------------------------------------------------------------
# Pure-JAX reference with identical numerics (bf16 operands, f32 accumulate)
# --------------------------------------------------------------------------
def reference_forward(params, x, edge_index, num_trg_nodes):
    n, c_in = x.shape
    vmem_cap = _vmem_capacity_bytes()
    tm, n_pad = _pick_row_tile(n, vmem_cap)
    a_i8, inv_deg = build_adj_counts(edge_index, n, n_pad)
    a_bf16 = a_i8.astype(jnp.bfloat16)
    h = (jnp.zeros((n_pad, LANE), jnp.float32)
         .at[:n, :c_in].set(x).astype(jnp.bfloat16))
    prepared = prepare_params(params)
    num_layers = len(prepared["convs"])
    for i, conv in enumerate(prepared["convs"]):
        xwl = jnp.dot(h, conv["w_l"],
                      preferred_element_type=jnp.float32).astype(jnp.bfloat16)
        agg = jnp.dot(a_bf16, xwl, preferred_element_type=jnp.float32) * inv_deg
        hh = agg + jnp.dot(h, conv["w_r"],
                           preferred_element_type=jnp.float32) + conv["b"]
        if i != num_layers - 1:
            hh = 0.5 * hh * (1.0 + jax.lax.erf(hh * _SQRT1_2))
        h = hh.astype(jnp.bfloat16)
    out = prepared["out"]
    c_true = out["c_true"]
    t = int(num_trg_nodes)
    y = jnp.dot(h[:t], out["w"], preferred_element_type=jnp.float32) + out["b"]
    mask = jnp.arange(LANE) < c_true
    y = jnp.where(mask, y, 0.0)
    mean = jnp.sum(y, axis=-1, keepdims=True) / c_true
    diff = jnp.where(mask, y - mean, 0.0)
    var = jnp.sum(diff * diff, axis=-1, keepdims=True) / c_true
    y = diff * jax.lax.rsqrt(var + 1e-12) * out["gamma"] + out["beta"]
    return y[:, :c_true]


# --------------------------------------------------------------------------
# Deterministic parameter construction (math layout: x @ W, shape (in, out))
# --------------------------------------------------------------------------
def init_params(key, in_channels, num_hidden_channels, num_layers):
    params = {"convs": []}
    for i in range(num_layers):
        c_in = in_channels if i == 0 else num_hidden_channels
        c_out = in_channels if i == num_layers - 1 else num_hidden_channels
        key, k1, k2 = jax.random.split(key, 3)
        params["convs"].append({
            "w_l": 0.05 * jax.random.normal(k1, (c_in, c_out), jnp.float32),
            "b_l": jnp.zeros((c_out,), jnp.float32),   # lin_l has bias, lin_r none
            "w_r": 0.05 * jax.random.normal(k2, (c_in, c_out), jnp.float32),
        })
    key, k3 = jax.random.split(key)
    params["out"] = {
        "w": 0.05 * jax.random.normal(k3, (in_channels, in_channels), jnp.float32),
        "b": jnp.zeros((in_channels,), jnp.float32),
        "gamma": jnp.ones((in_channels,), jnp.float32),
        "beta": jnp.zeros((in_channels,), jnp.float32),
    }
    return params


if __name__ == "__main__":
    IN_CHANNELS = 32
    HIDDEN = 64
    NUM_LAYERS = 3
    NUM_NODES = 512          # -> TM=128 => 4 row tiles per layer (2 per TC on v7x)
    NUM_EDGES = 2048
    NUM_TRG_NODES = 64

    key = jax.random.PRNGKey(0)
    key, kx, ks, kd, kp = jax.random.split(key, 5)

    x = jax.random.normal(kx, (NUM_NODES, IN_CHANNELS), jnp.float32)
    src = jax.random.randint(ks, (NUM_EDGES,), 0, NUM_NODES, jnp.int32)
    dst = jax.random.randint(kd, (NUM_EDGES,), 0, NUM_NODES, jnp.int32)
    edge_index = jnp.stack([src, dst], axis=0)   # (2, E)

    params = init_params(kp, IN_CHANNELS, HIDDEN, NUM_LAYERS)

    out = graphsage_encoder_forward(params, x, edge_index, NUM_TRG_NODES)
    out = jax.block_until_ready(out)

    ref = reference_forward(params, x, edge_index, NUM_TRG_NODES)
    assert out.shape == (NUM_TRG_NODES, IN_CHANNELS)
    assert jnp.allclose(out, ref, atol=2e-3, rtol=2e-3), "mismatch vs reference"

    print("KERNEL_OK")
</pallas_src>

<mosaic_0001>
module attributes {stable_mosaic.version = 11 : i64} {
  func.func @_sage_layer_kernel(%arg0: i32, %arg1: memref<128x512xi8, #tpu.memory_space<vmem>>, %arg2: memref<128x1xf32, #tpu.memory_space<vmem>>, %arg3: memref<512x128xbf16, #tpu.memory_space<vmem>>, %arg4: memref<512x128xbf16, #tpu.memory_space<vmem>>, %arg5: memref<128x128xbf16, #tpu.memory_space<vmem>>, %arg6: memref<1x128xf32, #tpu.memory_space<vmem>>, %arg7: memref<128x128xbf16, #tpu.memory_space<vmem>>) attributes {dimension_semantics = [#tpu.dimension_semantics<parallel>], iteration_bounds = array<i64: 4>, scalar_prefetch = 0 : i64, scratch_operands = 0 : i64, tpu.core_type = #tpu.core_type<tc>, window_params = [{transform_indices = @transform_0, window_bounds = array<i64: 128, 512>}, {transform_indices = @transform_1, window_bounds = array<i64: 128, 1>}, {pipeline_mode = #tpu.pipeline_mode<synchronous>, transform_indices = @transform_2, window_bounds = array<i64: 512, 128>}, {pipeline_mode = #tpu.pipeline_mode<synchronous>, transform_indices = @transform_3, window_bounds = array<i64: 512, 128>}, {pipeline_mode = #tpu.pipeline_mode<synchronous>, transform_indices = @transform_4, window_bounds = array<i64: 128, 128>}, {pipeline_mode = #tpu.pipeline_mode<synchronous>, transform_indices = @transform_5, window_bounds = array<i64: 1, 128>}, {transform_indices = @transform_6, window_bounds = array<i64: 128, 128>}]} {
    %c0 = arith.constant 0 : index
    %c0_0 = arith.constant 0 : index
    %0 = vector.load %arg1[%c0, %c0_0] : memref<128x512xi8, #tpu.memory_space<vmem>>, vector<128x512xi8>
    %1 = arith.sitofp %0 : vector<128x512xi8> to vector<128x512xbf16>
    %c0_1 = arith.constant 0 : index
    %c0_2 = arith.constant 0 : index
    %2 = vector.load %arg3[%c0_1, %c0_2] : memref<512x128xbf16, #tpu.memory_space<vmem>>, vector<512x128xbf16>
    %cst = arith.constant dense<0.000000e+00> : vector<128x128xf32>
    %3 = tpu.matmul %1, %2, %cst {dimension_numbers = #tpu.dot_dimension_numbers<[1], [0], [0], [1], [0, 0, 1, 1], [], []>} : vector<128x512xbf16>, vector<512x128xbf16>, vector<128x128xf32> -> vector<128x128xf32>
    %c0_3 = arith.constant 0 : index
    %c0_4 = arith.constant 0 : index
    %4 = vector.load %arg2[%c0_3, %c0_4] : memref<128x1xf32, #tpu.memory_space<vmem>>, vector<128x1xf32>
    %5 = vector.broadcast %4 : vector<128x1xf32> to vector<128x128xf32>
    %6 = arith.mulf %3, %5 : vector<128x128xf32>
    %c128_i32 = arith.constant 128 : i32
    %7 = arith.muli %arg0, %c128_i32 : i32
    %8 = tpu.assume_multiple %7, 128 : i32
    %9 = arith.index_cast %8 : i32 to index
    %c0_5 = arith.constant 0 : index
    %10 = vector.load %arg4[%9, %c0_5] : memref<512x128xbf16, #tpu.memory_space<vmem>>, vector<128x128xbf16>
    %c0_6 = arith.constant 0 : index
    %c0_7 = arith.constant 0 : index
    %11 = vector.load %arg5[%c0_6, %c0_7] : memref<128x128xbf16, #tpu.memory_space<vmem>>, vector<128x128xbf16>
    %cst_8 = arith.constant dense<0.000000e+00> : vector<128x128xf32>
    %12 = tpu.matmul %10, %11, %cst_8 {dimension_numbers = #tpu.dot_dimension_numbers<[1], [0], [0], [1], [0, 0, 1, 1], [], []>} : vector<128x128xbf16>, vector<128x128xbf16>, vector<128x128xf32> -> vector<128x128xf32>
    %13 = arith.addf %6, %12 : vector<128x128xf32>
    %c0_9 = arith.constant 0 : index
    %c0_10 = arith.constant 0 : index
    %14 = vector.load %arg6[%c0_9, %c0_10] : memref<1x128xf32, #tpu.memory_space<vmem>>, vector<1x128xf32>
    %15 = vector.broadcast %14 : vector<1x128xf32> to vector<128x128xf32>
    %16 = arith.addf %13, %15 : vector<128x128xf32>
    %cst_11 = arith.constant 5.000000e-01 : f32
    %17 = vector.broadcast %cst_11 : f32 to vector<128x128xf32>
    %18 = arith.mulf %17, %16 : vector<128x128xf32>
    %cst_12 = arith.constant 0.707106769 : f32
    %19 = vector.broadcast %cst_12 : f32 to vector<128x128xf32>
    %20 = arith.mulf %16, %19 : vector<128x128xf32>
    %21 = math.erf %20 : vector<128x128xf32>
    %cst_13 = arith.constant 1.000000e+00 : f32
    %22 = vector.broadcast %cst_13 : f32 to vector<128x128xf32>
    %23 = arith.addf %22, %21 : vector<128x128xf32>
    %24 = arith.mulf %18, %23 : vector<128x128xf32>
    %25 = arith.truncf %24 : vector<128x128xf32> to vector<128x128xbf16>
    %c0_14 = arith.constant 0 : index
    %c0_15 = arith.constant 0 : index
    %26 = vector.load %arg7[%c0_14, %c0_15] : memref<128x128xbf16, #tpu.memory_space<vmem>>, vector<128x128xbf16>
    tpu.vector_store %arg7[%c0_14, %c0_15], %25 {strides = array<i32>} : memref<128x128xbf16, #tpu.memory_space<vmem>>, vector<128x128xbf16>,
    return
  }
  func.func @transform_0(%arg0: i32) -> (i32, i32) {
    %c0_i32 = arith.constant 0 : i32
    %c0_i32_0 = arith.constant 0 : i32
    return %arg0, %c0_i32 : i32, i32
  }
  func.func @transform_1(%arg0: i32) -> (i32, i32) {
    %c0_i32 = arith.constant 0 : i32
    %c0_i32_0 = arith.constant 0 : i32
    return %arg0, %c0_i32 : i32, i32
  }
  func.func @transform_2(%arg0: i32) -> (i32, i32) {
    %c0_i32 = arith.constant 0 : i32
    %c0_i32_0 = arith.constant 0 : i32
    %c0_i32_1 = arith.constant 0 : i32
    return %c0_i32, %c0_i32_0 : i32, i32
  }
  func.func @transform_3(%arg0: i32) -> (i32, i32) {
    %c0_i32 = arith.constant 0 : i32
    %c0_i32_0 = arith.constant 0 : i32
    %c0_i32_1 = arith.constant 0 : i32
    return %c0_i32, %c0_i32_0 : i32, i32
  }
  func.func @transform_4(%arg0: i32) -> (i32, i32) {
    %c0_i32 = arith.constant 0 : i32
    %c0_i32_0 = arith.constant 0 : i32
    %c0_i32_1 = arith.constant 0 : i32
    return %c0_i32, %c0_i32_0 : i32, i32
  }
  func.func @transform_5(%arg0: i32) -> (i32, i32) {
    %c0_i32 = arith.constant 0 : i32
    %c0_i32_0 = arith.constant 0 : i32
    %c0_i32_1 = arith.constant 0 : i32
    return %c0_i32, %c0_i32_0 : i32, i32
  }
  func.func @transform_6(%arg0: i32) -> (i32, i32) {
    %c0_i32 = arith.constant 0 : i32
    %c0_i32_0 = arith.constant 0 : i32
    return %arg0, %c0_i32 : i32, i32
  }
}

</mosaic_0001>

<bundles_post_ra>
// kernel: tpu_custom_call.1
= control target key start
LH: loop header
LB: loop body
LE: loop exit
PB: predicated region body
PF: predicated region fallthrough
CT: control target
= control target key end

     0   :  { %11 = vsyncpa [#allocation3], 0  ;;  %s2565_s0 = inlined_call_operand.vmem [shape: s8[512,512], index: 0, kind: input, shape index: {}]   ;;  %s2566_s1 = inlined_call_operand.vmem [shape: f32[512,1], index: 1, kind: input, shape index: {}]   ;;  %s2567_s2 = inlined_call_operand.hbm [shape: bf16[512,128], index: 2, kind: input, shape index: {}]   ;;  %s2568_s3 = inlined_call_operand.hbm [shape: bf16[512,128], index: 3, kind: input, shape index: {}]   ;;  %s2569_s4 = inlined_call_operand.hbm [shape: bf16[128,128], index: 4, kind: input, shape index: {}]   ;;  %s2570_s5 = inlined_call_operand.vmem [shape: f32[1,128], index: 5, kind: input, shape index: {}]   ;;  %s2571_s6 = inlined_call_operand.hbm [shape: bf16[512,128], index: 6, kind: output, shape index: {}]  }
   0x1   :  { %12 = vsyncpa [#allocation6], 0 }
   0x2   :  { %13 = vsyncpa [#allocation4], 0 }
   0x3   :  { %15 = vsyncpa [#allocation4 + $0x1], 0  ;;  %s2177_s21 = smov 0   ;;  %s2179_s22 = smov 0  }
   0x4   :  { %s2181_s23 = smov 0   ;;  %s2183_s24 = smov 0  }
   0x5 LB: > { %s2198_s25 = sadd.s32 4294967295, %s2131_s24   ;;  %s1483_s26 = sadd.s32 4294967294, %s2131_s24   ;;  %s2131_s24 = sphi %s2183_s24, %s2611_s24   ;;  %s2127_s23 = sphi %s2181_s23, %s2610_s23   ;;  %s2123_s22 = sphi %s2179_s22, %s2609_s22   ;;  %s2119_s21 = sphi %s2177_s21, %s2608_s21  }
   0x6   : > { %s2202_s27 = sadd.s32 1, %s2131_s24   ;;  %s164_s28 = sadd.s32 1, %s2127_s23 }
   0x7   : > { %s161_s29 = ssub.s32 %s2131_s24, %s2202_s27  ;;  %p174_p0 = scmp.ne.s32.totalorder %s2127_s23, %s2123_s22 }
   0x8   : > { %p162_p1 = scmp.eq.s32.totalorder %s161_s29, 0  ;;  %p175_p2 = scmp.eq.s32.totalorder %s2198_s25, 3 }
   0x9   : > { %p180_p3 = scmp.ne.s32.totalorder %s2123_s22, %s2119_s21  ;;  %p181_p4 = scmp.eq.s32.totalorder %s1483_s26, 3 }
   0xa   : > { %s2213_s30 = scalar_select %p162_p1, %s2127_s23, %s164_s28  }
   0xb   : > { %p2215_p5 = por %p175_p2, %p174_p0  ;;  %p2219_p6 = por %p181_p4, %p180_p3 }
   0xc   : > { %p1484_p7 = scmp.ge.s32.totalorder %s2131_s24, 1  ;;  %p188_p8 = scmp.lt.s32.totalorder %s2131_s24, 5 }
   0xd   : > { %s2574_s7 = scalar_select %p2215_p5, 1, 0 }
   0xe   : > { %s2575_s8 = scalar_select %p2219_p6, 1, 0 }
   0xf   : > { %p2572_p9 = scmp.eq.s32.totalorder %s2198_s25, 0  ;;  %p2226_p10 = pnand %p1484_p7, %p188_p8 }
  0x10   : > { %s2133_s10 = smov [#allocation5]   ;;  %s2134_s13 = smov [#allocation2]  }
  0x11   : > { %p1842_p11 = pneg %p2226_p10  ;;  %s213_s11 = sshll.u32 %s2133_s10, 4  ;;  %s214_s11 = int_to_ptr.vmem [resolvable:$true] %s213_s11 }
  0x12   : > { %s200_s14 = sshll.u32 %s2134_s13, 4  ;;  %s2135_s15 = smov [#allocation7]   ;;  %s201_s14 = int_to_ptr.vmem [resolvable:$true] %s200_s14 }
  0x13   : > { %p2234_p12 = pnand %p2572_p9, %p1842_p11  ;;  %s226_s16 = sshll.u32 %s2135_s15, 4  ;;  %s227_s16 = int_to_ptr.vmem [resolvable:$true] %s226_s16 }
  0x14   : > { %s1996_s17 = scalar_lea.vmem %s214_s11, 4096  ;;  %p2004_p3 = scmp.lt.s32.totalorder %s214_s11, %s214_s11 }
  0x15   : > { %p1987_p13 = pneg %p2234_p12  ;;  %p1997_p0 = scmp.ne.s32.totalorder %s214_s11, %s1996_s17 }
  0x16   : > { %p2005_p4 = scmp.lt.s32.totalorder %s1996_s17, %s1996_s17 }
  0x17   : > { %p1999_p1 = pnand %p1997_p0, %p1987_p13 }
  0x18   : > { %p2006_p7 = por %p2005_p4, %p2004_p3 }
  0x19   : > { %p2000_p2 = pneg %p1999_p1 }
  0x1b   : > { %p2007_p8 = pnand %p2006_p7, %p2000_p2 }
  0x1d   : > { %2010 = shalt.err (!%p2007_p8)
}
  0x1e   : > { %s2136_s18 = smov 64   ;;  %s2137_s19 = smov 4  }
  0x1f   : > { %1848 = dma.hbm_to_vmem [thread:$0]  (!%p2234_p12), %s2568_s3, 4096, %s214_s11, [#allocation6], %s2136_s18, %s2136_s18, %s2137_s19  }
  0x20   : > { %s2022_s28 = scalar_lea.vmem %s201_s14, 4096  ;;  %p2030_p9 = scmp.lt.s32.totalorder %s201_s14, %s201_s14 }
  0x21   : > { %p2023_p11 = scmp.ne.s32.totalorder %s201_s14, %s2022_s28  ;;  %p2031_p6 = scmp.lt.s32.totalorder %s2022_s28, %s2022_s28 }
  0x23   : > { %p2025_p0 = pnand %p2023_p11, %p1987_p13  ;;  %p2032_p3 = por %p2031_p6, %p2030_p9 }
  0x25   : > { %p2026_p1 = pneg %p2025_p0 }
  0x27   : > { %p2033_p2 = pnand %p2032_p3, %p2026_p1 }
  0x29   : > { %2036 = shalt.err (!%p2033_p2)
}
  0x2a   : > { %1845 = dma.hbm_to_vmem [thread:$0]  (!%p2234_p12), %s2567_s2, 4096, %s201_s14, [#allocation3], %s2136_s18, %s2136_s18, %s2137_s19  }
  0x2b   : > { %s2048_s11 = scalar_lea.vmem %s227_s16, 1024  ;;  %p2056_p11 = scmp.lt.s32.totalorder %s227_s16, %s227_s16 }
  0x2c   : > { %p2049_p4 = scmp.ne.s32.totalorder %s227_s16, %s2048_s11  ;;  %p2057_p0 = scmp.lt.s32.totalorder %s2048_s11, %s2048_s11 }
  0x2e   : > { %p2051_p7 = pnand %p2049_p4, %p1987_p13  ;;  %p2058_p5 = por %p2057_p0, %p2056_p11 }
  0x30   : > { %p2052_p8 = pneg %p2051_p7 }
  0x32   : > { %p2059_p6 = pnand %p2058_p5, %p2052_p8 }
  0x34   : > { %2062 = shalt.err (!%p2059_p6)
}
  0x35   : > { %1851 = dma.hbm_to_vmem [thread:$0]  (!%p2234_p12), %s2569_s4, 1024, %s227_s16, [#allocation6], %s2136_s18, %s2136_s18, %s2137_s19  }
  0x36   : > { %264 = sbr.rel (%p2226_p10) target bundleno = 413 (0x19d), region = 44 }
  0x3b   : > { %p2578_p9 = scmp.eq.s32.totalorder %s2198_s25, 0 }
  0x3d   : > { %2106 = dma.done.wait (%p2578_p9), [#allocation3], 4096   ;;  %p2579_p13 = pmov %p2578_p9 }
  0x3e   : > { %p2580_p1 = pmov %p2578_p9 }
  0x3f   : > { %2108 = vsyncadd (%p2579_p13), [#allocation3], 4294963200 }
  0x40   : > { %2110 = dma.done.wait (%p2580_p1), [#allocation6], 5120   ;;  %p2581_p5 = pmov %p2580_p1 }
  0x41   : > { %v2138_v0 = vmov 0   ;;  %v1905_v1 = vld [vmem:[#allocation2 + $0x78] sm:$0xff]   ;;  %v1909_v5 = vld [vmem:[#allocation2 + $0x70] sm:$0xff]   ;;  %v1913_v9 = vld [vmem:[#allocation2 + $0x68] sm:$0xff]   ;;  %s1494_s9 = sshll.u32 %s2198_s25, 2  ;;  %s1531_s18 = sshll.u32 %s2198_s25, 7 }
  0x42   : > { %2112 = vsyncadd (%p2581_p5), [#allocation6], 4294962176  ;;  %1903 = vset.pattern.permute.xlu0 %v2138_v0  ;;  %1904 = vset.pattern.permute.xlu1 %v2138_v0  ;;  %v1906_v2 = vld [vmem:[#allocation2 + $0xf8] sm:$0xff]   ;;  %v1910_v6 = vld [vmem:[#allocation2 + $0xf0] sm:$0xff]   ;;  %p309_p10 = scmp.lt.s32.totalorder %s1494_s9, 15  ;;  %s1497_s19 = sshll.u32 %s2198_s25, 4 }
  0x43   : > { %1636 = vmatprep.subr.bf16.mxu0 %v1905_v1  ;;  %v1907_v3 = vld [vmem:[#allocation2 + $0x38] sm:$0xff]   ;;  %1700 = vmatprep.subr.bf16.mxu1 %v1906_v2  ;;  %v1911_v7 = vld [vmem:[#allocation2 + $0x30] sm:$0xff]   ;;  %v1914_v10 = vld [vmem:[#allocation2 + $0xe8] sm:$0xff]   ;;  %s934_s20 = sshra.s32 %s1531_s18, 3  ;;  %p316_p12 = scmp.lt.s32.totalorder %s1497_s19, 63 }
  0x44   : > { %v1908_v4 = vld [vmem:[#allocation2 + $0xb8] sm:$0xff]   ;;  %1637 = vmatpush3.bf16.msra.mxu0 %v1907_v3  ;;  %v1912_v8 = vld [vmem:[#allocation2 + $0xb0] sm:$0xff]   ;;  %v1915_v11 = vld [vmem:[#allocation2 + $0x28] sm:$0xff]   ;;  %s2613_s9 = smov (!%p309_p10, %s1494_s9), 15  ;;  %s1532_s26 = sshll.u32 %s934_s20, 2 }
  0x45   : > { %1701 = vmatpush3.bf16.msra.mxu1 %v1908_v4  ;;  %1638 = vmatprep.subr.bf16.mxu0 %v1909_v5  ;;  %v1916_v12 = vld [vmem:[#allocation2 + $0xa8] sm:$0xff]   ;;  %v1917_v13 = vld [vmem:[#allocation2 + $0x60] sm:$0xff]   ;;  %v1921_v17 = vld [vmem:[#allocation2 + $0x58] sm:$0xff]   ;;  %s1571_s12 = sshll.u32 %s2613_s9, 5  ;;  %s2615_s19 = smov (!%p316_p12, %s1497_s19), 63 }
  0x46   : > { %1702 = vmatprep.subr.bf16.mxu1 %v1910_v6  ;;  %v1918_v14 = vld [vmem:[#allocation2 + $0xe0] sm:$0xff]   ;;  %v1922_v18 = vld [vmem:[#allocation2 + $0xd8] sm:$0xff]   ;;  %v1925_v21 = vld [vmem:[#allocation2 + $0x50] sm:$0xff]   ;;  %s2278_s17 = scalar_lea.vmem %s2565_s0, %s1571_s12  ;;  %s2290_s28 = scalar_lea.vmem [#allocation5], %s1532_s26 }
  0x47   : > { %v1919_v15 = vld [vmem:[#allocation2 + $0x20] sm:$0xff]   ;;  %v1923_v19 = vld [vmem:[#allocation2 + $0x18] sm:$0xff]   ;;  %v1926_v22 = vld [vmem:[#allocation2 + $0xd0] sm:$0xff]   ;;  %s1498_s29 = sshll.u32 %s2615_s19, 3  ;;  %s305_s12 = sand.u32 1, %s2123_s22  }
  0x48   : > { %1639 = vmatpush3.bf16.msra.mxu0 %v1911_v7  ;;  %v1920_v16 = vld [vmem:[#allocation2 + $0xa0] sm:$0xff]   ;;  %v1924_v20 = vld [vmem:[#allocation2 + $0x98] sm:$0xff]   ;;  %v1927_v23 = vld [vmem:[#allocation2 + $0x10] sm:$0xff]   ;;  %s2295_s13 = scalar_lea.vmem %s2566_s1, %s1498_s29  ;;  %s1493_s14 = sshll.u32 %s305_s12, 6 }
  0x49   : > { %1703 = vmatpush3.bf16.msra.mxu1 %v1912_v8  ;;  %1640 = vmatprep.subr.bf16.mxu0 %v1913_v9  ;;  %v1928_v24 = vld [vmem:[#allocation2 + $0x90] sm:$0xff]   ;;  %v1929_v25 = vld [vmem:[#allocation2 + $0x48] sm:$0xff]   ;;  %v1933_v29 = vld [vmem:[#allocation2 + $0x40] sm:$0xff]   ;;  %s2496_s16 = scalar_lea.vmem [#allocation8], %s1493_s14  ;;  %p2606_p2 = scmp.ne.s32.totalorder %s2574_s7, 0 }
  0x4a   : > { %1704 = vmatprep.subr.bf16.mxu1 %v1914_v10  ;;  %v1930_v26 = vld [vmem:[#allocation2 + $0xc8] sm:$0xff]   ;;  %v1934_v30 = vld [vmem:[#allocation2 + $0xc0] sm:$0xff]   ;;  %v326_v34 = vld [vmem:[%s2278_s17 + $0x18] sm:$0xff]  ;;  %s1376_s18 = sshll.u32 %s2496_s16, 4  ;;  %s2139_s29 = smov [#allocation8]   ;;  %s2520_s18 = int_to_ptr.vmem [resolvable:$true] %s1376_s18 }
  0x4b   : > { %v1931_v27 = vld [vmem:[#allocation2 + $0x8] sm:$0xff]   ;;  %v1935_v31 = vld [vmem:[#allocation2] sm:$0xff]   ;;  %v342_v37 = vunpack.c.l.s8.bf16 %v326_v34  ;;  %v325_v38 = vld [vmem:[%s2278_s17 + $0x10] sm:$0xff]  ;;  %v346_v43 = vunpack.c.h.s8.bf16 %v326_v34  ;;  %s2067_s10 = sshll.u32 %s2139_s29, 4  ;;  %s2068_s10 = int_to_ptr.vmem [resolvable:$false] %s2067_s10 }
  0x4c   : > { %1641 = vmatpush3.bf16.msra.mxu0 %v1915_v11  ;;  %v1932_v28 = vld [vmem:[#allocation2 + $0x88] sm:$0xff]   ;;  %v1936_v32 = vld [vmem:[#allocation2 + $0x80] sm:$0xff]   ;;  %v341_v40 = vunpack.c.l.s8.bf16 %v325_v38  ;;  %v1937_v41 = vld [vmem:[#allocation7 + $0x38] sm:$0xff]   ;;  %v345_v49 = vunpack.c.h.s8.bf16 %v325_v38  ;;  %s2069_s11 = scalar_lea.vmem %s2068_s10, 2048  ;;  %p2070_p8 = scmp.lt.s32.totalorder %s2520_s18, %s2068_s10 }
  0x4d   : > { %1705 = vmatpush3.bf16.msra.mxu1 %v1916_v12  ;;  %1642 = vmatprep.subr.bf16.mxu0 %v1917_v13  ;;  %v324_v33 = vld [vmem:[%s2278_s17 + $0x8] sm:$0xff]  ;;  %v323_v35 = vld [vmem:[%s2278_s17] sm:$0xff]  ;;  %v1938_v44 = vld [vmem:[#allocation7 + $0x30] sm:$0xff]  }
  0x4e   : > { %1706 = vmatprep.subr.bf16.mxu1 %v1918_v14  ;;  %v340_v36 = vunpack.c.l.s8.bf16 %v324_v33  ;;  %v339_v39 = vunpack.c.l.s8.bf16 %v323_v35  ;;  %v344_v42 = vunpack.c.h.s8.bf16 %v324_v33  ;;  %756 = vmatprep.mubr.bf16.mxu1 %v342_v37  ;;  %v328_v45 = vld [vmem:[%s2278_s17 + $0x28] sm:$0xff]  ;;  %v330_v46 = vld [vmem:[%s2278_s17 + $0x38] sm:$0xff]  ;;  %v343_v48 = vunpack.c.h.s8.bf16 %v323_v35  ;;  %v1940_v52 = vld [vmem:[#allocation7 + $0x20] sm:$0xff]  }
  0x4f   : > { %v1939_v47 = vld [vmem:[#allocation7 + $0x28] sm:$0xff]   ;;  %v348_v50 = vunpack.c.l.s8.bf16 %v328_v45  ;;  %v350_v51 = vunpack.c.l.s8.bf16 %v330_v46  ;;  %v327_v53 = vld [vmem:[%s2278_s17 + $0x20] sm:$0xff]  ;;  %v329_v54 = vld [vmem:[%s2278_s17 + $0x30] sm:$0xff]  ;;  %v352_v58 = vunpack.c.h.s8.bf16 %v328_v45  ;;  %v354_v59 = vunpack.c.h.s8.bf16 %v330_v46 }
  0x50   : > { %1643 = vmatpush3.bf16.msra.mxu0 %v1919_v15  ;;  %659 = vmatprep.mubr.bf16.mxu0 %v340_v36  ;;  %v1941_v55 = vld [vmem:[#allocation7 + $0x18] sm:$0xff]   ;;  %v347_v56 = vunpack.c.l.s8.bf16 %v327_v53  ;;  %v349_v57 = vunpack.c.l.s8.bf16 %v329_v54  ;;  %v1942_v60 = vld [vmem:[#allocation7 + $0x10] sm:$0xff]   ;;  %v821_v61 = vld [vmem:[%s2295_s13] sm:$0xff]  ;;  %v351_v2 = vunpack.c.h.s8.bf16 %v327_v53  ;;  %v353_v3 = vunpack.c.h.s8.bf16 %v329_v54 }
  0x51   : > { %1707 = vmatpush3.bf16.msra.mxu1 %v1920_v16  ;;  %1644 = vmatprep.subr.bf16.mxu0 %v1921_v17  ;;  %v332_v62 = vld [vmem:[%s2278_s17 + $0x48] sm:$0xff]  ;;  %v334_v63 = vld [vmem:[%s2278_s17 + $0x58] sm:$0xff]  ;;  %v823_v0 = vld [vmem:[%s2295_s13 + $0x10] sm:$0xff] }
  0x52   : > { %1708 = vmatprep.subr.bf16.mxu1 %v1922_v18  ;;  %v1943_v1 = vld [vmem:[#allocation7 + $0x8] sm:$0xff]   ;;  %839 = vperm.xlu0 %1903, %v821_v61   ;;  %v356_v4 = vunpack.c.l.s8.bf16 %v332_v62  ;;  %v358_v5 = vunpack.c.l.s8.bf16 %v334_v63  ;;  %v1944_v6 = vld [vmem:[#allocation7] sm:$0xff]   ;;  %v333_v8 = vld [vmem:[%s2278_s17 + $0x50] sm:$0xff]  ;;  %v360_v13 = vunpack.c.h.s8.bf16 %v332_v62  ;;  %v362_v14 = vunpack.c.h.s8.bf16 %v334_v63 }
  0x53   : > { %849 = vperm.xlu1 %1904, %v823_v0   ;;  %v331_v7 = vld [vmem:[%s2278_s17 + $0x40] sm:$0xff]  ;;  %v822_v9 = vld [vmem:[%s2295_s13 + $0x8] sm:$0xff]  ;;  %v824_v10 = vld [vmem:[%s2295_s13 + $0x18] sm:$0xff]  ;;  %v357_v12 = vunpack.c.l.s8.bf16 %v333_v8 }
  0x54   : > { %1645 = vmatpush3.bf16.msra.mxu0 %v1923_v19  ;;  %v355_v11 = vunpack.c.l.s8.bf16 %v331_v7  ;;  %v825_v15 = vld [vmem:[%s2295_s13 + $0x20] sm:$0xff]  ;;  %v826_v16 = vld [vmem:[%s2295_s13 + $0x28] sm:$0xff]  ;;  %v338_v18 = vld [vmem:[%s2278_s17 + $0x78] sm:$0xff] }
  0x55   : > { %1709 = vmatpush3.bf16.msra.mxu1 %v1924_v20  ;;  %1646 = vmatprep.subr.bf16.mxu0 %v1925_v21  ;;  %v336_v17 = vld [vmem:[%s2278_s17 + $0x68] sm:$0xff]  ;;  %v827_v19 = vld [vmem:[%s2295_s13 + $0x30] sm:$0xff]  ;;  %v828_v20 = vld [vmem:[%s2295_s13 + $0x38] sm:$0xff]  ;;  %v359_v21 = vunpack.c.h.s8.bf16 %v331_v7  ;;  %v370_v34 = vunpack.c.h.s8.bf16 %v338_v18 }
  0x56   : > { %1710 = vmatprep.subr.bf16.mxu1 %v1926_v22  ;;  %844 = vperm.xlu0 %1903, %v822_v9   ;;  %v361_v22 = vunpack.c.h.s8.bf16 %v333_v8  ;;  %v368_v33 = vunpack.c.h.s8.bf16 %v336_v17  ;;  %v834_v35 = vld [vmem:[%s2295_s13 + $0x68] sm:$0xff]  ;;  %v833_v36 = vld [vmem:[%s2295_s13 + $0x60] sm:$0xff]  ;;  %v836_v37 = vld [vmem:[%s2295_s13 + $0x78] sm:$0xff] }
  0x57   : > { %854 = vperm.xlu1 %1904, %v824_v10   ;;  %v835_v38 = vld [vmem:[%s2295_s13 + $0x70] sm:$0xff] }
  0x58   : > { %1647 = vmatpush3.bf16.msra.mxu0 %v1927_v23  ;;  %v364_v23 = vunpack.c.l.s8.bf16 %v336_v17  ;;  %v1949_v45 = vld [vmem:[%s2290_s28 + $0x10] sm:$0xff]  }
  0x59   : > { %1711 = vmatpush3.bf16.msra.mxu1 %v1928_v24  ;;  %1648 = vmatprep.subr.bf16.mxu0 %v1929_v25  ;;  %v366_v24 = vunpack.c.l.s8.bf16 %v338_v18  ;;  %v830_v25 = vld [vmem:[%s2295_s13 + $0x48] sm:$0xff]  ;;  %v1950_v46 = vld [vmem:[%s2290_s28 + $0x30] sm:$0xff]  }
  0x5a   : > { %1712 = vmatprep.subr.bf16.mxu1 %v1930_v26  ;;  %859 = vperm.xlu0 %1903, %v825_v15   ;;  %v829_v26 = vld [vmem:[%s2295_s13 + $0x40] sm:$0xff] }
  0x5b   : > { %864 = vperm.xlu1 %1904, %v826_v16  }
  0x5c   : > { %1649 = vmatpush3.bf16.msra.mxu0 %v1931_v27  ;;  %v335_v27 = vld [vmem:[%s2278_s17 + $0x60] sm:$0xff] }
  0x5d   : > { %1713 = vmatpush3.bf16.msra.mxu1 %v1932_v28  ;;  %1650 = vmatprep.subr.bf16.mxu0 %v1933_v29  ;;  %v337_v28 = vld [vmem:[%s2278_s17 + $0x70] sm:$0xff]  ;;  %v832_v29 = vld [vmem:[%s2295_s13 + $0x58] sm:$0xff]  ;;  %s1588_s17 = sshll.u32 %s2198_s25, 10  ;;  %s2525_s25 = scalar_lea.sflag [#allocation4], %s305_s12 }
  0x5e   : > { %1714 = vmatprep.subr.bf16.mxu1 %v1934_v30  ;;  %869 = vperm.xlu0 %1903, %v827_v19   ;;  %v831_v30 = vld [vmem:[%s2295_s13 + $0x50] sm:$0xff]  ;;  %s2518_s26 = scalar_lea.hbm %s2571_s6, %s1588_s17 }
  0x5f   : > { %874 = vperm.xlu1 %1904, %v828_v20  }
  0x60   : > { %1651 = vmatpush3.bf16.msra.mxu0 %v1935_v31  ;;  %v363_v31 = vunpack.c.l.s8.bf16 %v335_v27 }
  0x61   : > { %1715 = vmatpush3.bf16.msra.mxu1 %v1936_v32  ;;  %1780 = vmatprep.subr.bf16.mxu0 %v1937_v41  ;;  %v365_v32 = vunpack.c.l.s8.bf16 %v337_v28 }
  0x62   : > { %1812 = vmatprep.subr.bf16.mxu1 %v1937_v41  ;;  %879 = vperm.xlu0 %1903, %v829_v26  }
  0x63   : > { %660 = vmatmul.mubr.bf16.vlgmr.msra.gmra.mxu0 %v339_v39  ;;  %884 = vperm.xlu1 %1904, %v830_v25   ;;  %v367_v39 = vunpack.c.h.s8.bf16 %v335_v27 }
  0x64   : > { %757 = vmatmul.mubr.bf16.vlgmr.msra.gmra.mxu1 %v341_v40  ;;  %1781 = vmatpush3.bf16.msra.mxu0 %v1937_v41  ;;  %v369_v40 = vunpack.c.h.s8.bf16 %v337_v28 }
  0x65   : > { %1820 = vmatpush3.bf16.msra.mxu1 %v1937_v41  ;;  %667 = vmatprep.mubr.bf16.mxu0 %v344_v42  ;;  %v1945_v41 = vld [vmem:[%s2290_s28] sm:$0xff]  }
  0x66   : > { %764 = vmatprep.mubr.bf16.mxu1 %v346_v43  ;;  %1782 = vmatprep.subr.bf16.mxu0 %v1938_v44  ;;  %v1946_v42 = vld [vmem:[%s2290_s28 + $0x20] sm:$0xff]   ;;  %v1947_v43 = vld [vmem:[%s2290_s28 + $0x8] sm:$0xff]  }
  0x67   : > { %1813 = vmatprep.subr.bf16.mxu1 %v1938_v44  ;;  %894 = vperm.xlu1 %1904, %v832_v29  }
  0x68   : > { %1783 = vmatpush3.bf16.msra.mxu0 %v1938_v44  ;;  %889 = vperm.xlu0 %1903, %v831_v30  }
  0x69   : > { %1821 = vmatpush3.bf16.msra.mxu1 %v1938_v44  ;;  %1784 = vmatprep.subr.bf16.mxu0 %v1939_v47  ;;  %v1948_v44 = vld [vmem:[%s2290_s28 + $0x28] sm:$0xff]  }
  0x6a   : > { %1814 = vmatprep.subr.bf16.mxu1 %v1939_v47 }
  0x6b   : > { %668 = vmatmul.mubr.bf16.gmra.mxu0 %v343_v48  ;;  %904 = vperm.xlu1 %1904, %v834_v35   ;;  %v1952_v48 = vld [vmem:[%s2290_s28 + $0x38] sm:$0xff]  }
  0x6c   : > { %765 = vmatmul.mubr.bf16.gmra.mxu1 %v345_v49  ;;  %675 = vmatprep.mubr.bf16.mxu0 %v348_v50 }
  0x6d   : > { %772 = vmatprep.mubr.bf16.mxu1 %v350_v51  ;;  %1785 = vmatpush3.bf16.msra.mxu0 %v1939_v47 }
  0x6e   : > { %1822 = vmatpush3.bf16.msra.mxu1 %v1939_v47  ;;  %1786 = vmatprep.subr.bf16.mxu0 %v1940_v52  ;;  %v1951_v47 = vld [vmem:[%s2290_s28 + $0x18] sm:$0xff]   ;;  %s2063_s28 = scalar_lea.vmem %s2520_s18, 1024 }
  0x6f   : > { %1815 = vmatprep.subr.bf16.mxu1 %v1940_v52  ;;  %899 = vperm.xlu0 %1903, %v833_v36   ;;  %p2064_p3 = scmp.ne.s32.totalorder %s2520_s18, %s2063_s28  ;;  %p2071_p11 = scmp.lt.s32.totalorder %s2069_s11, %s2063_s28 }
  0x70   : > { %914 = vperm.xlu1 %1904, %v836_v37  }
  0x71   : > { %1787 = vmatpush3.bf16.msra.mxu0 %v1940_v52  ;;  %p2065_p4 = pnand %p2064_p3, %p2606_p2  ;;  %p2072_p0 = por %p2071_p11, %p2070_p8 }
  0x72   : > { %1823 = vmatpush3.bf16.msra.mxu1 %v1940_v52  ;;  %1788 = vmatprep.subr.bf16.mxu0 %v1941_v55 }
  0x73   : > { %1816 = vmatprep.subr.bf16.mxu1 %v1941_v55  ;;  %676 = vmatmul.mubr.bf16.gmra.mxu0 %v347_v56  ;;  %p2066_p7 = pneg %p2065_p4 }
  0x74   : > { %773 = vmatmul.mubr.bf16.gmra.mxu1 %v349_v57  ;;  %683 = vmatprep.mubr.bf16.mxu0 %v352_v58 }
  0x75   : > { %780 = vmatprep.mubr.bf16.mxu1 %v354_v59  ;;  %1789 = vmatpush3.bf16.msra.mxu0 %v1941_v55  ;;  %p2073_p6 = pnand %p2072_p0, %p2066_p7 }
  0x76   : > { %1824 = vmatpush3.bf16.msra.mxu1 %v1941_v55  ;;  %1790 = vmatprep.subr.bf16.mxu0 %v1942_v60 }
  0x77   : > { %1817 = vmatprep.subr.bf16.mxu1 %v1942_v60  ;;  %909 = vperm.xlu0 %1903, %v835_v38  }
  0x79   : > { %1791 = vmatpush3.bf16.msra.mxu0 %v1942_v60 }
  0x7a   : > { %1825 = vmatpush3.bf16.msra.mxu1 %v1942_v60  ;;  %1792 = vmatprep.subr.bf16.mxu0 %v1943_v1 }
  0x7b   : > { %1818 = vmatprep.subr.bf16.mxu1 %v1943_v1  ;;  %684 = vmatmul.mubr.bf16.gmra.mxu0 %v351_v2 }
  0x7c   : > { %781 = vmatmul.mubr.bf16.gmra.mxu1 %v353_v3  ;;  %691 = vmatprep.mubr.bf16.mxu0 %v356_v4 }
  0x7d   : > { %788 = vmatprep.mubr.bf16.mxu1 %v358_v5  ;;  %1793 = vmatpush3.bf16.msra.mxu0 %v1943_v1 }
  0x7e   : > { %1826 = vmatpush3.bf16.msra.mxu1 %v1943_v1  ;;  %1794 = vmatprep.subr.bf16.mxu0 %v1944_v6 }
  0x7f   : > { %1819 = vmatprep.subr.bf16.mxu1 %v1944_v6 }
  0x81   : > { %1795 = vmatpush3.bf16.msra.mxu0 %v1944_v6 }
  0x82   : > { %1827 = vmatpush3.bf16.msra.mxu1 %v1944_v6 }
  0x83   : > { %692 = vmatmul.mubr.bf16.gmra.mxu0 %v355_v11 }
  0x84   : > { %789 = vmatmul.mubr.bf16.gmra.mxu1 %v357_v12  ;;  %699 = vmatprep.mubr.bf16.mxu0 %v360_v13 }
  0x85   : > { %796 = vmatprep.mubr.bf16.mxu1 %v362_v14 }
  0x8b   : > { %700 = vmatmul.mubr.bf16.gmra.mxu0 %v359_v21 }
  0x8c   : > { %797 = vmatmul.mubr.bf16.gmra.mxu1 %v361_v22  ;;  %707 = vmatprep.mubr.bf16.mxu0 %v364_v23 }
  0x8d   : > { %804 = vmatprep.mubr.bf16.mxu1 %v366_v24 }
  0x93   : > { %708 = vmatmul.mubr.bf16.gmra.mxu0 %v363_v31 }
  0x94   : > { %805 = vmatmul.mubr.bf16.gmra.mxu1 %v365_v32  ;;  %715 = vmatprep.mubr.bf16.mxu0 %v368_v33 }
  0x95   : > { %812 = vmatprep.mubr.bf16.mxu1 %v370_v34 }
  0x9b   : > { %716 = vmatmul.mubr.bf16.gmra.mxu0 %v367_v39 }
  0x9c   : > { %813 = vmatmul.mubr.bf16.gmra.mxu1 %v369_v40  ;;  %1796 = vmatprep.mubr.bf16.mxu0 %v1945_v41 }
  0x9d   : > { %1804 = vmatprep.mubr.bf16.mxu1 %v1946_v42 }
  0xa3   : > { %1797 = vmatmul.mubr.bf16.vlgmr.msra.gmra.mxu0 %v1947_v43 }
  0xa4   : > { %1805 = vmatmul.mubr.bf16.vlgmr.msra.gmra.mxu1 %v1948_v44  ;;  %1800 = vmatprep.mubr.bf16.mxu0 %v1949_v45 }
  0xa5   : > { %1808 = vmatprep.mubr.bf16.mxu1 %v1950_v46 }
  0xab   : > { %1801 = vmatmul.mubr.bf16.gmra.mxu0 %v1951_v47 }
  0xac   : > { %1809 = vmatmul.mubr.bf16.gmra.mxu1 %v1952_v48 }
  0xcd   : > { %v2353_v21 = vpop.permute.xlu0 %839 }
  0xce   : > { %v2355_v26 = vpop.permute.xlu1 %849 }
  0xcf   : > { %2583 = vst [vmem:[#allocation13_spill] sm:$0xff] %v2355_v26 }
  0xd1   : > { %v845_v29 = vpop.permute.xlu0 %844 }
  0xd2   : > { %v2357_v34 = vpop.permute.xlu1 %854 }
  0xd3   : > { %2584 = vst [vmem:[#allocation14_spill] sm:$0xff] %v2357_v34 }
  0xd5   : > { %v2359_v35 = vpop.permute.xlu0 %859 }
  0xd6   : > { %2585 = vst [vmem:[#allocation15_spill] sm:$0xff] %v2359_v35  ;;  %v2365_v40 = vpop.permute.xlu1 %864 }
  0xd7   : > { %2588 = vst [vmem:[#allocation18_spill] sm:$0xff] %v2365_v40 }
  0xd9   : > { %v2367_v41 = vpop.permute.xlu0 %869 }
  0xda   : > { %2589 = vst [vmem:[#allocation19_spill] sm:$0xff] %v2367_v41  ;;  %v2377_v26 = vpop.permute.xlu1 %874 }
 0x123   : > { %v1652_v49 = vpop.f32.mrf.mxu0 }
 0x124   : > { %v1716_v50 = vpop.f32.mrf.mxu1 }
 0x125   : > { %v1653_v51 = vpop.f32.mrf.mxu0 }
 0x126   : > { %v1717_v52 = vpop.f32.mrf.mxu1  ;;  %v1654_v44 = vadd.f32 %v1653_v51, %v1652_v49 }
 0x127   : > { %v1655_v53 = vpop.f32.mrf.mxu0  ;;  %v1718_v45 = vadd.f32 %v1717_v52, %v1716_v50 }
 0x128   : > { %v1719_v54 = vpop.f32.mrf.mxu1 }
 0x129   : > { %v1656_v55 = vpop.f32.mrf.mxu0  ;;  %v759_v50 = vadd.f32 %v1718_v45, %v1654_v44  ;;  %v2600_v44 = vld [vmem:[#allocation14_spill] sm:$0xff] }
 0x12a   : > { %v1720_v56 = vpop.f32.mrf.mxu1  ;;  %v1657_v48 = vadd.f32 %v1656_v55, %v1655_v53 }
 0x12b   : > { %v1658_v57 = vpop.f32.mrf.mxu0  ;;  %v1721_v35 = vadd.f32 %v1720_v56, %v1719_v54 }
 0x12c   : > { %v1722_v58 = vpop.f32.mrf.mxu1 }
 0x12d   : > { %v1659_v59 = vpop.f32.mrf.mxu0 }
 0x12e   : > { %v1723_v60 = vpop.f32.mrf.mxu1  ;;  %v1660_v34 = vadd.f32 %v1659_v59, %v1658_v57 }
 0x12f   : > { %v2329_v61 = vpop.f32.mrf.mxu0 }
 0x130   : > { %v2331_v62 = vpop.f32.mrf.mxu1 }
 0x131   : > { %v2333_v63 = vpop.f32.mrf.mxu0 }
 0x132   : > { %v2335_v0 = vpop.f32.mrf.mxu1  ;;  %v1663_v53 = vadd.f32 %v2333_v63, %v2329_v61 }
 0x133   : > { %v2337_v1 = vpop.f32.mrf.mxu0  ;;  %v1727_v54 = vadd.f32 %v2335_v0, %v2331_v62 }
 0x134   : > { %v2339_v2 = vpop.f32.mrf.mxu1 }
 0x135   : > { %v2341_v3 = vpop.f32.mrf.mxu0 }
 0x136   : > { %v2343_v4 = vpop.f32.mrf.mxu1  ;;  %v1666_v55 = vadd.f32 %v2341_v3, %v2337_v1  ;;  %v917_v1 = vmul.f32 %v2353_v21, %v759_v50 }
 0x137   : > { %v2345_v5 = vpop.f32.mrf.mxu0  ;;  %v1730_v56 = vadd.f32 %v2343_v4, %v2339_v2  ;;  %v770_v2 = vadd.f32 %v1727_v54, %v1663_v53 }
 0x138   : > { %v2347_v6 = vpop.f32.mrf.mxu1 }
 0x139   : > { %v2349_v7 = vpop.f32.mrf.mxu0  ;;  %v775_v4 = vadd.f32 %v1730_v56, %v1666_v55  ;;  %v920_v45 = vmul.f32 %v2600_v44, %v770_v2 }
 0x13a   : > { %v2351_v8 = vpop.f32.mrf.mxu1 }
 0x13b   : > { %2582 = vst [vmem:[#allocation12_spill] sm:$0xff] %v2351_v8  ;;  %v1670_v9 = vpop.f32.mrf.mxu0 }
 0x13c   : > { %v1734_v10 = vpop.f32.mrf.mxu1 }
 0x13d   : > { %v1671_v11 = vpop.f32.mrf.mxu0 }
 0x13e   : > { %v1735_v12 = vpop.f32.mrf.mxu1  ;;  %v1672_v57 = vadd.f32 %v1671_v11, %v1670_v9  ;;  %v1669_v9 = vadd.f32 %v2349_v7, %v2345_v5  ;;  %v2400_v5 = vld [vmem:[%s2570_s5] ss:$0 sm:$0xff] }
 0x13f   : > { %v1673_v13 = vpop.f32.mrf.mxu0 }
 0x140   : > { %v1737_v14 = vpop.f32.mrf.mxu1 }
 0x141   : > { %v1674_v15 = vpop.f32.mrf.mxu0 }
 0x142   : > { %v1738_v16 = vpop.f32.mrf.mxu1 }
 0x143   : > { %v1676_v17 = vpop.f32.mrf.mxu0 }
 0x144   : > { %v1740_v18 = vpop.f32.mrf.mxu1 }
 0x145   : > { %v1677_v19 = vpop.f32.mrf.mxu0 }
 0x146   : > { %v1741_v20 = vpop.f32.mrf.mxu1 }
 0x147   : > { %v1679_v22 = vpop.f32.mrf.mxu0  ;;  %v1742_v8 = vadd.f32 %v1741_v20, %v1740_v18  ;;  %v1739_v18 = vadd.f32 %v1738_v16, %v1737_v14  ;;  %v2595_v14 = vld [vmem:[#allocation13_spill] sm:$0xff] }
 0x148   : > { %v1743_v23 = vpop.f32.mrf.mxu1 }
 0x149   : > { %v1680_v24 = vpop.f32.mrf.mxu0 }
 0x14a   : > { %v1744_v25 = vpop.f32.mrf.mxu1  ;;  %v1681_v61 = vadd.f32 %v1680_v24, %v1679_v22 }
 0x14b   : > { %v1682_v27 = vpop.f32.mrf.mxu0  ;;  %v1745_v63 = vadd.f32 %v1744_v25, %v1743_v23 }
 0x14c   : > { %v1746_v28 = vpop.f32.mrf.mxu1 }
 0x14d   : > { %v1683_v30 = vpop.f32.mrf.mxu0  ;;  %v794_v24 = vadd.f32 %v1745_v63, %v1681_v61 }
 0x14e   : > { %v1747_v31 = vpop.f32.mrf.mxu1 }
 0x14f   : > { %v1685_v32 = vpop.f32.mrf.mxu0  ;;  %v1748_v49 = vadd.f32 %v1747_v31, %v1746_v28 }
 0x150   : > { %v1749_v33 = vpop.f32.mrf.mxu1 }
 0x151   : > { %v1686_v36 = vpop.f32.mrf.mxu0 }
 0x152   : > { %v1750_v37 = vpop.f32.mrf.mxu1 }
 0x153   : > { %v2361_v38 = vpop.f32.mrf.mxu0  ;;  %v1751_v62 = vadd.f32 %v1750_v37, %v1749_v33 }
 0x154   : > { %2586 = vst [vmem:[#allocation16_spill] sm:$0xff] %v2361_v38  ;;  %v2363_v39 = vpop.f32.mrf.mxu1  ;;  %v1724_v38 = vadd.f32 %v1723_v60, %v1722_v58  ;;  %v1736_v58 = vadd.f32 %v1735_v12, %v1734_v10  ;;  %v2594_v10 = vld [vmem:[#allocation12_spill] sm:$0xff] }
 0x155   : > { %2587 = vst [vmem:[#allocation17_spill] sm:$0xff] %v2363_v39  ;;  %v2369_v42 = vpop.f32.mrf.mxu0  ;;  %v880_v39 = vpop.permute.xlu0 %879  ;;  %v1733_v11 = vadd.f32 %v2594_v10, %v2347_v6 }
 0x156   : > { %2590 = vst [vmem:[#allocation20_spill] sm:$0xff] %v2369_v42  ;;  %v2371_v43 = vpop.f32.mrf.mxu1  ;;  %v1678_v42 = vadd.f32 %v1677_v19, %v1676_v17  ;;  %v1675_v17 = vadd.f32 %v1674_v15, %v1673_v13  ;;  %v885_v19 = vpop.permute.xlu1 %884 }
 0x157   : > { %2591 = vst [vmem:[#allocation21_spill] sm:$0xff] %v2371_v43  ;;  %v2373_v46 = vpop.f32.mrf.mxu0  ;;  %v1684_v43 = vadd.f32 %v1683_v30, %v1682_v27  ;;  %v1687_v30 = vadd.f32 %v1686_v36, %v1685_v32 }
 0x158   : > { %2592 = vst [vmem:[#allocation22_spill] sm:$0xff] %v2373_v46  ;;  %v2375_v47 = vpop.f32.mrf.mxu1  ;;  %v762_v46 = vadd.f32 %v1721_v35, %v1657_v48  ;;  %v791_v20 = vadd.f32 %v1742_v8, %v1678_v42  ;;  %v783_v8 = vadd.f32 %v1736_v58, %v1672_v57  ;;  %v786_v16 = vadd.f32 %v1739_v18, %v1675_v17 }
 0x159   : > { %2593 = vst [vmem:[#allocation23_spill] sm:$0xff] %v2375_v47  ;;  %v2379_v40 = vpop.f32.mrf.mxu0  ;;  %v767_v47 = vadd.f32 %v1724_v38, %v1660_v34  ;;  %v890_v27 = vpop.permute.xlu0 %889  ;;  %v799_v28 = vadd.f32 %v1748_v49, %v1684_v43  ;;  %v802_v25 = vadd.f32 %v1751_v62, %v1687_v30  ;;  %v2410_v48 = vadd.f32 %v1733_v11, %v1669_v9  ;;  %v2602_v49 = vld [vmem:[#allocation19_spill] sm:$0xff] }
 0x15a   : > { %v2381_v41 = vpop.f32.mrf.mxu1  ;;  %v918_v3 = vmul.f32 %v845_v29, %v762_v46  ;;  %v925_v22 = vmul.f32 %v880_v39, %v791_v20  ;;  %v895_v6 = vpop.permute.xlu1 %894  ;;  %v2601_v46 = vld [vmem:[#allocation15_spill] sm:$0xff]  ;;  %v923_v50 = vmul.f32 %v2602_v49, %v783_v8  ;;  %v924_v57 = vmul.f32 %v2377_v26, %v786_v16 }
 0x15b   : > { %v1694_v51 = vpop.f32.mrf.mxu0  ;;  %v919_v15 = vmul.f32 %v2595_v14, %v767_v47  ;;  %v927_v23 = vmul.f32 %v890_v27, %v799_v28  ;;  %v2596_v34 = vld [vmem:[#allocation16_spill] sm:$0xff]  ;;  %v2408_v47 = vmul.f32 %v2601_v46, %v775_v4  ;;  %v926_v18 = vmul.f32 %v885_v19, %v794_v24 }
 0x15c   : > { %v1758_v52 = vpop.f32.mrf.mxu1  ;;  %v2598_v37 = vld [vmem:[#allocation17_spill] sm:$0xff] }
 0x15d   : > { %v1695_v59 = vpop.f32.mrf.mxu0  ;;  %v900_v33 = vpop.permute.xlu0 %899  ;;  %v2597_v35 = vld [vmem:[#allocation20_spill] sm:$0xff] }
 0x15e   : > { %v1759_v60 = vpop.f32.mrf.mxu1  ;;  %v1696_v21 = vadd.f32 %v1695_v59, %v1694_v51  ;;  %v1690_v36 = vadd.f32 %v2597_v35, %v2596_v34  ;;  %v2599_v38 = vld [vmem:[#allocation21_spill] sm:$0xff]  ;;  %v905_v9 = vpop.permute.xlu1 %904 }
 0x15f   : > { %v1697_v0 = vpop.f32.mrf.mxu0  ;;  %v1760_v29 = vadd.f32 %v1759_v60, %v1758_v52  ;;  %v1754_v39 = vadd.f32 %v2599_v38, %v2598_v37  ;;  %v928_v60 = vmul.f32 %v895_v6, %v802_v25  ;;  %v2603_v27 = vld [vmem:[#allocation22_spill] sm:$0xff] }
 0x160   : > { %v1761_v31 = vpop.f32.mrf.mxu1  ;;  %v1693_v28 = vadd.f32 %v2379_v40, %v2603_v27  ;;  %v2604_v14 = vld [vmem:[#allocation23_spill] sm:$0xff] }
 0x161   : > { %v1698_v12 = vpop.f32.mrf.mxu0  ;;  %v815_v58 = vadd.f32 %v1760_v29, %v1696_v21  ;;  %v807_v20 = vadd.f32 %v1754_v39, %v1690_v36  ;;  %v910_v19 = vpop.permute.xlu0 %909 }
 0x162   : > { %v1762_v13 = vpop.f32.mrf.mxu1  ;;  %v1699_v10 = vadd.f32 %v1698_v12, %v1697_v0  ;;  %v915_v44 = vpop.permute.xlu1 %914 }
 0x163   : > { %v1798_v32 = vpop.f32.mrf.mxu0  ;;  %v1763_v11 = vadd.f32 %v1762_v13, %v1761_v31  ;;  %v929_v6 = vmul.f32 %v900_v33, %v807_v20 }
 0x164   : > { %v1806_v7 = vpop.f32.mrf.mxu1  ;;  %v1165_v42 = vadd.f32 %v1798_v32, %v919_v15  ;;  %v1757_v15 = vadd.f32 %v2381_v41, %v2604_v14 }
 0x165   : > { %v1173_v43 = vadd.f32 %v1806_v7, %v927_v23  ;;  %v1100_v51 = vpop.f32.mrf.mxu0  ;;  %v931_v23 = vmul.f32 %v910_v19, %v815_v58  ;;  %v818_v32 = vadd.f32 %v1763_v11, %v1699_v10 }
 0x166   : > { %v1132_v52 = vpop.f32.mrf.mxu1  ;;  %v2414_v53 = vadd.f32 %v2400_v5, %v1165_v42  ;;  %v1163_v55 = vadd.f32 %v1100_v51, %v917_v1  ;;  %v810_v34 = vadd.f32 %v1757_v15, %v1693_v28 }
 0x167   : > { %v2417_v54 = vadd.f32 %v2400_v5, %v1173_v43  ;;  %v1171_v56 = vadd.f32 %v1132_v52, %v925_v22  ;;  %v1799_v59 = vpop.f32.mrf.mxu0 }
 0x168   : > { %v1807_v17 = vpop.f32.mrf.mxu1  ;;  %v1220_v61 = vmul.f32 0.70710677, %v2414_v53  ;;  %v2425_v30 = vadd.f32 %v2400_v5, %v1163_v55  ;;  %v1166_v26 = vadd.f32 %v1799_v59, %v920_v45  ;;  %v932_v55 = vmul.f32 %v915_v44, %v818_v32 }
 0x169   : > { %v1228_v63 = vmul.f32 0.70710677, %v2417_v54  ;;  %v2428_v62 = vadd.f32 %v2400_v5, %v1171_v56  ;;  %v1174_v1 = vadd.f32 %v1807_v17, %v928_v60  ;;  %v1103_v2 = vpop.f32.mrf.mxu0  ;;  %v1204_v14 = vmul.f32 0.5, %v2414_v53 }
 0x16a   : > { %v1135_v4 = vpop.f32.mrf.mxu1  ;;  %v1164_v8 = vadd.f32 %v1103_v2, %v918_v3  ;;  %1953 = verf.f32 %v1220_v61  ;;  %v1218_v16 = vmul.f32 0.70710677, %v2425_v30  ;;  %v2435_v21 = vadd.f32 %v2400_v5, %v1166_v26 }
 0x16b   : > { %v1172_v40 = vadd.f32 %v1135_v4, %v926_v18  ;;  %v1802_v22 = vpop.f32.mrf.mxu0  ;;  %v1226_v25 = vmul.f32 0.70710677, %v2428_v62  ;;  %v2438_v29 = vadd.f32 %v2400_v5, %v1174_v1  ;;  %1955 = verf.f32 %v1228_v63 }
 0x16c   : > { %v1810_v24 = vpop.f32.mrf.mxu1  ;;  %v2441_v0 = vadd.f32 %v2400_v5, %v1164_v8  ;;  %v1169_v31 = vadd.f32 %v1802_v22, %v923_v50  ;;  %1957 = verf.f32 %v1218_v16  ;;  %v1221_v7 = vmul.f32 0.70710677, %v2435_v21  ;;  %v2605_v50 = vld [vmem:[#allocation18_spill] sm:$0xff] }
 0x16d   : > { %v2444_v41 = vadd.f32 %v2400_v5, %v1172_v40  ;;  %v1177_v3 = vadd.f32 %v1810_v24, %v931_v23  ;;  %v1116_v12 = vpop.f32.mrf.mxu0  ;;  %1959 = verf.f32 %v1226_v25  ;;  %v1229_v35 = vmul.f32 0.70710677, %v2438_v29 }
 0x16e   : > { %v1148_v13 = vpop.f32.mrf.mxu1  ;;  %v1219_v36 = vmul.f32 0.70710677, %v2441_v0  ;;  %1961 = verf.f32 %v1221_v7  ;;  %v2451_v39 = vadd.f32 %v2400_v5, %v1169_v31  ;;  %v1167_v33 = vadd.f32 %v1116_v12, %v2408_v47 }
 0x16f   : > { %v1803_v37 = vpop.f32.mrf.mxu0  ;;  %v1227_v38 = vmul.f32 0.70710677, %v2444_v41  ;;  %v2454_v42 = vadd.f32 %v2400_v5, %v1177_v3  ;;  %1963 = verf.f32 %v1229_v35  ;;  %v1175_v45 = vadd.f32 %v1148_v13, %v929_v6 }
 0x170   : > { %v1811_v43 = vpop.f32.mrf.mxu1  ;;  %v1170_v46 = vadd.f32 %v1803_v37, %v924_v57  ;;  %v922_v51 = vmul.f32 %v2605_v50, %v2410_v48  ;;  %1965 = verf.f32 %v1219_v36  ;;  %v1224_v52 = vmul.f32 0.70710677, %v2451_v39 }
 0x171   : > { %v1119_v49 = vpop.f32.mrf.mxu0  ;;  %1967 = verf.f32 %v1227_v38  ;;  %v1232_v56 = vmul.f32 0.70710677, %v2454_v42  ;;  %v2462_v58 = vadd.f32 %v2400_v5, %v1167_v33  ;;  %v2465_v59 = vadd.f32 %v2400_v5, %v1175_v45 }
 0x172   : > { %v2468_v47 = vadd.f32 %v2400_v5, %v1170_v46  ;;  %v1178_v57 = vadd.f32 %v1811_v43, %v932_v55  ;;  %v1168_v60 = vadd.f32 %v1119_v49, %v922_v51  ;;  %v1151_v17 = vpop.f32.mrf.mxu1  ;;  %1969 = verf.f32 %v1224_v52 }
 0x173   : > { %v1222_v48 = vmul.f32 0.70710677, %v2462_v58  ;;  %v930_v18 = vmul.f32 %v905_v9, %v810_v34  ;;  %1971 = verf.f32 %v1232_v56  ;;  %v1230_v20 = vmul.f32 0.70710677, %v2465_v59 }
 0x174   : > { %v1225_v27 = vmul.f32 0.70710677, %v2468_v47  ;;  %v2474_v28 = vadd.f32 %v2400_v5, %v1178_v57  ;;  %v2477_v61 = vadd.f32 %v2400_v5, %v1168_v60  ;;  %v1212_v15 = vmul.f32 0.5, %v2417_v54 }
 0x175   : > { %1973 = verf.f32 %v1222_v48  ;;  %v1176_v63 = vadd.f32 %v1151_v17, %v930_v18  ;;  %v1202_v22 = vmul.f32 0.5, %v2425_v30  ;;  %v1210_v3 = vmul.f32 0.5, %v2428_v62 }
 0x176   : > { %1975 = verf.f32 %v1230_v20  ;;  %v1233_v1 = vmul.f32 0.70710677, %v2474_v28  ;;  %v1223_v2 = vmul.f32 0.70710677, %v2477_v61  ;;  %v1213_v13 = vmul.f32 0.5, %v2438_v29 }
 0x177   : > { %v1954_v26 = vpop.eup %1953  ;;  %1977 = verf.f32 %v1225_v27  ;;  %v2482_v9 = vadd.f32 %v2400_v5, %v1176_v63  ;;  %v1205_v5 = vmul.f32 0.5, %v2435_v21  ;;  %v1203_v30 = vmul.f32 0.5, %v2441_v0 }
 0x178   : > { %v1956_v4 = vpop.eup %1955  ;;  %1979 = verf.f32 %v1233_v1  ;;  %v1252_v11 = vadd.f32 1.0, %v1954_v26  ;;  %v1211_v36 = vmul.f32 0.5, %v2444_v41  ;;  %v1208_v56 = vmul.f32 0.5, %v2451_v39 }
 0x179   : > { %v1958_v19 = vpop.eup %1957  ;;  %1981 = verf.f32 %v1223_v2  ;;  %v1231_v8 = vmul.f32 0.70710677, %v2482_v9  ;;  %v1260_v16 = vadd.f32 1.0, %v1956_v4  ;;  %v1209_v60 = vmul.f32 0.5, %v2468_v47 }
 0x17a   : > { %v1960_v10 = vpop.eup %1959  ;;  %v1250_v24 = vadd.f32 1.0, %v1958_v19  ;;  %v1268_v54 = vmul.f32 %v1252_v11, %v1204_v14  ;;  %v1216_v18 = vmul.f32 0.5, %v2454_v42  ;;  %v1206_v20 = vmul.f32 0.5, %v2462_v58 }
 0x17b   : > { %v1962_v40 = vpop.eup %1961  ;;  %1983 = verf.f32 %v1231_v8  ;;  %v1258_v12 = vadd.f32 1.0, %v1960_v10  ;;  %v1276_v34 = vmul.f32 %v1260_v16, %v1212_v15  ;;  %v1217_v27 = vmul.f32 0.5, %v2474_v28 }
 0x17c   : > { %v1964_v23 = vpop.eup %1963  ;;  %v1253_v25 = vadd.f32 1.0, %v1962_v40  ;;  %v1266_v38 = vmul.f32 %v1250_v24, %v1202_v22  ;;  %v1207_v2 = vmul.f32 0.5, %v2477_v61  ;;  %v1214_v28 = vmul.f32 0.5, %v2465_v59 }
 0x17d   : > { %v1966_v31 = vpop.eup %1965  ;;  %v1261_v53 = vadd.f32 1.0, %v1964_v23  ;;  %v1274_v33 = vmul.f32 %v1258_v12, %v1210_v3  ;;  %v1215_v40 = vmul.f32 0.5, %v2482_v9 }
 0x17e   : > { %v1968_v32 = vpop.eup %1967  ;;  %v1269_v7 = vmul.f32 %v1253_v25, %v1205_v5  ;;  %v1251_v6 = vadd.f32 1.0, %v1966_v31 }
 0x17f   : > { %v1277_v35 = vmul.f32 %v1261_v53, %v1213_v13  ;;  %v1259_v21 = vadd.f32 1.0, %v1968_v32  ;;  %v1970_v37 = vpop.eup %1969 }
 0x180   : > { %v1597_v43 = vpack.c.bf16 %v1269_v7, %v1268_v54  ;;  %v1267_v44 = vmul.f32 %v1251_v6, %v1203_v30  ;;  %v1972_v62 = vpop.eup %1971  ;;  %v1256_v50 = vadd.f32 1.0, %v1970_v37 }
 0x181   : > { %v1617_v45 = vpack.c.bf16 %v1277_v35, %v1276_v34  ;;  %v1275_v29 = vmul.f32 %v1259_v21, %v1211_v36  ;;  %v1264_v52 = vadd.f32 1.0, %v1972_v62 }
 0x182   : > { %v1974_v46 = vpop.eup %1973  ;;  %1629 = vst [vmem:[%s2496_s16 + $0x8] sm:$0xff] %v1597_v43   ;;  %v1592_v0 = vpack.c.bf16 %v1267_v44, %v1266_v38  ;;  %v1272_v26 = vmul.f32 %v1256_v50, %v1208_v56 }
 0x183   : > { %v1976_v49 = vpop.eup %1975  ;;  %1633 = vst [vmem:[%s2496_s16 + $0x28] sm:$0xff] %v1617_v45   ;;  %v1612_v41 = vpack.c.bf16 %v1275_v29, %v1274_v33  ;;  %v1254_v57 = vadd.f32 1.0, %v1974_v46  ;;  %v1280_v4 = vmul.f32 %v1264_v52, %v1216_v18 }
 0x184   : > { %v1978_v51 = vpop.eup %1977  ;;  %1593 = vst [vmem:[%s2496_s16] sm:$0xff] %v1592_v0   ;;  %v1262_v47 = vadd.f32 1.0, %v1976_v49 }
 0x185   : > { %v1980_v55 = vpop.eup %1979  ;;  %1632 = vst [vmem:[%s2496_s16 + $0x20] sm:$0xff] %v1612_v41   ;;  %v1257_v17 = vadd.f32 1.0, %v1978_v51  ;;  %v1270_v42 = vmul.f32 %v1254_v57, %v1206_v20 }
 0x186   : > { %v1982_v48 = vpop.eup %1981  ;;  %v1265_v63 = vadd.f32 1.0, %v1980_v55  ;;  %v1278_v15 = vmul.f32 %v1262_v47, %v1214_v28 }
 0x187   : > { %v1273_v1 = vmul.f32 %v1257_v17, %v1209_v60  ;;  %v1255_v39 = vadd.f32 1.0, %v1982_v48 }
 0x188   : > { %v1281_v19 = vmul.f32 %v1265_v63, %v1217_v27  ;;  %v1984_v10 = vpop.eup %1983 }
 0x189   : > { %v1607_v11 = vpack.c.bf16 %v1273_v1, %v1272_v26  ;;  %v1271_v58 = vmul.f32 %v1255_v39, %v1207_v2  ;;  %v1263_v14 = vadd.f32 1.0, %v1984_v10 }
 0x18a   : > { %v1627_v8 = vpack.c.bf16 %v1281_v19, %v1280_v4 }
 0x18b   : > { %1631 = vst [vmem:[%s2496_s16 + $0x18] sm:$0xff] %v1607_v11   ;;  %v1602_v61 = vpack.c.bf16 %v1271_v58, %v1270_v42  ;;  %v1279_v16 = vmul.f32 %v1263_v14, %v1215_v40 }
 0x18c   : > { %1635 = vst [vmem:[%s2496_s16 + $0x38] sm:$0xff] %v1627_v8  }
 0x18d   : > { %1630 = vst [vmem:[%s2496_s16 + $0x10] sm:$0xff] %v1602_v61   ;;  %v1622_v59 = vpack.c.bf16 %v1279_v16, %v1278_v15 }
 0x18f   : > { %1634 = vst [vmem:[%s2496_s16 + $0x30] sm:$0xff] %v1622_v59  }
 0x190   : > { %2076 = shalt.err (!%p2073_p6)
}
 0x191   : > { %s2077_s13 = scalar_lea.hbm %s2518_s26, 1024  ;;  %s2081_s12 = scalar_lea.hbm %s2571_s6, 4096 }
 0x192   : > { %p2078_p9 = scmp.ne.s32.totalorder %s2518_s26, %s2077_s13  ;;  %p2082_p5 = scmp.lt.s32.totalorder %s2518_s26, %s2571_s6 }
 0x193   : > { %p2083_p10 = scmp.lt.s32.totalorder %s2081_s12, %s2077_s13 }
 0x194   : > { %p2079_p13 = pnand %p2078_p9, %p2606_p2 }
 0x195   : > { %p2084_p12 = por %p2083_p10, %p2082_p5 }
 0x196   : > { %p2080_p1 = pneg %p2079_p13 }
 0x198   : > { %p2085_p3 = pnand %p2084_p12, %p2080_p1 }
 0x19a   : > { %2088 = shalt.err (!%p2085_p3)
}
 0x19b   : > { %s2140_s17 = smov 64   ;;  %s2141_s19 = smov 4  }
 0x19c   : > { %1840 = dma.vmem_to_hbm [thread:$0]  (%p2606_p2), %s2520_s18, 1024, %s2518_s26, %s2525_s25, %s2140_s17, %s2140_s17, %s2141_s19  }
 0x19d PF: > { %p1862_p4 = scmp.ge.s32.totalorder %s2131_s24, 2  ;;  %s1391_s20 = sand.u32 1, %s2119_s21  }
 0x19e   : > { %p2607_p7 = scmp.ne.s32.totalorder %s2575_s8, 0  ;;  %s1392_s28 = scalar_lea.sflag [#allocation4], %s1391_s20 }
 0x1a0   : > { %p1853_p8 = pnand %p1862_p4, %p2607_p7 }
 0x1a2   : > { %p1854_p11 = pneg %p1853_p8 }
 0x1a4   : > { %2114 = dma.done.wait (%p1854_p11), %s1392_s28, 1024  }
 0x1a5   : > { %2116 = vsyncadd (%p1854_p11), %s1392_s28, 4294966272  ;;  %p18_p0 = scmp.ge.s32.totalorder %s2202_s27, 6   ;;  %s2608_s21 = smov %s2123_s22 }
 0x1a6   : > { %s2609_s22 = smov %s2127_s23  ;;  %s2610_s23 = smov %s2213_s30 }
 0x1a7   : > { %s2611_s24 = smov %s2202_s27  ;;  %20 = sbr.rel (!%p18_p0) target bundleno = 5 (0x5), region = 96 }
 0x1ac   :  { %1397 = vsyncpa [#allocation3], 1 }
 0x1ad   :  { %1399 = vsyncpa [#allocation3 + $0x1], 1 }
 0x1ae   :  { %1400 = vsyncpa [#allocation6], 1 }
 0x1af   :  { %1401 = vsyncpa [#allocation4], 1 }
 0x1b0   :  { %1403 = vsyncpa [#allocation4 + $0x1], 1 }

</bundles_post_ra>
